<compile_context>
chip_gen: v7x
topology: tpu7x:2x2x1
jax: 0.10.0
libtpu: 0.0.40
codegen_flags: <defaults>
</compile_context>

<pallas_src>
import functools

import jax
import jax.numpy as jnp
from jax.experimental import pallas as pl
from jax.experimental.pallas import tpu as pltpu

NEG_SLOPE = 0.01  # default nn.LeakyReLU negative_slope


def genconv_kernel(x1_ref, x2_ref, w_ref, b_ref, o_ref, *, K):
    # x1_ref: (1, Cin, TH, Wp)  padded-input rows [r*TH, (r+1)*TH)
    # x2_ref: (1, Cin, TH, Wp)  padded-input rows [(r+1)*TH, (r+2)*TH) (halo)
    # w_ref : (Cout, K*K*Cin)   filter, contraction ordered (dy, dx, cin)
    # b_ref : (Cout, 1)         f32 bias
    # o_ref : (1, Cout, TH*W)   flattened-NCHW output tile
    _, Cin, TH, Wp = x1_ref.shape
    Cout = w_ref.shape[0]
    W = Wp - (K - 1)

    # Row window of TH + K - 1 padded input rows (tile rows + bottom halo).
    x1 = x1_ref[0]                                   # (Cin, TH, Wp)
    x2 = x2_ref[0]                                   # (Cin, TH, Wp)
    xwin = jnp.concatenate([x1, x2[:, : K - 1, :]], axis=1)  # (Cin, TH+K-1, Wp)

    # im2col patch matrix: rows ordered (dy, dx, cin); columns = flattened
    # (row, col) of the output tile so the big spatial dim lands in lanes.
    slabs = []
    for dy in range(K):
        for dx in range(K):
            slab = xwin[:, dy:dy + TH, dx:dx + W]    # (Cin, TH, W)
            slabs.append(slab.reshape(Cin, TH * W))
    patches = jnp.concatenate(slabs, axis=0)         # (K*K*Cin, TH*W)

    # Single MXU matmul per tile, f32 accumulation.
    acc = jnp.dot(w_ref[...], patches,
                  preferred_element_type=jnp.float32)  # (Cout, TH*W) f32

    acc = acc + b_ref[...]                           # (Cout, 1) broadcast
    act = jnp.where(acc > 0, acc, NEG_SLOPE * acc)   # LeakyReLU
    o_ref[...] = act.reshape(1, Cout, TH * W).astype(o_ref.dtype)


def _per_step_vmem_bytes(Cin, Cout, K, TH, W, Wp, in_bytes, out_bytes):
    """Rough per-grid-step VMEM working set (incl. double-buffered pipeline)."""
    blk_in = Cin * TH * Wp * in_bytes                # one padded-input row block
    blk_w = Cout * K * K * Cin * in_bytes
    blk_b = Cout * 4
    blk_out = Cout * TH * W * out_bytes
    scratch = (Cin * (TH + K - 1) * Wp * in_bytes    # row window
               + K * K * Cin * TH * W * in_bytes     # im2col patches
               + Cout * TH * W * 4)                  # f32 accumulator
    return 2 * (2 * blk_in + blk_w + blk_b + blk_out) + scratch


def _choose_row_tile(H, W, Cin, Cout, K, in_bytes, out_bytes,
                     budget_bytes=12 * 1024 * 1024):
    """Largest output-row tile that divides H, keeps (8,128)-friendly blocks
    (TH % 8 == 0 and (TH*W) % 128 == 0, or TH == H) and fits a conservative
    VMEM budget (sized so it also fits v7x's smaller 64 MiB VMEM)."""
    Wp = W + 2 * (K // 2)
    cands = [th for th in range(H, 0, -1)
             if H % th == 0 and th >= K - 1
             and (th == H or (th % 8 == 0 and (th * W) % 128 == 0))]
    if not cands:
        return H
    for th in cands:
        if _per_step_vmem_bytes(Cin, Cout, K, th, W, Wp,
                                in_bytes, out_bytes) <= budget_bytes:
            return th
    return cands[-1]


def genconv(x_nchw, weight_oihw, bias, *, kernel_size, row_tile=None,
            compute_dtype=jnp.bfloat16):
    """GenConv forward: 'SAME' conv2d (stride 1, dilation 1) + LeakyReLU(0.01).

    PyTorch layouts in/out (NCHW / OIHW / (Cout,)).  The matmul runs in
    `compute_dtype` (bf16 by default) with f32 accumulation and f32 epilogue.
    """
    # TODO(synk): stride!=1, dilation!=1 and the SYMMETRIC/REFLECT padding
    # branches of GenConv are not implemented (module defaults only).
    N, Cin, H, W = x_nchw.shape
    Cout = weight_oihw.shape[0]
    K = int(kernel_size)
    assert K % 2 == 1, "even kernel_size 'SAME' output-size not supported"
    pad = K // 2

    in_bytes = jnp.dtype(compute_dtype).itemsize
    out_bytes = jnp.dtype(x_nchw.dtype).itemsize
    TH = (_choose_row_tile(H, W, Cin, Cout, K, in_bytes, out_bytes)
          if row_tile is None else int(row_tile))
    assert H % TH == 0 and TH >= K - 1, (TH, H, K)
    assert TH == H or (TH % 8 == 0 and (TH * W) % 128 == 0), (
        "row_tile must keep (8,128)-aligned blocks")
    n_rt = H // TH

    # Spatial zero padding (top/left = pad); bottom is padded out to a full
    # extra row block so the halo BlockSpec never indexes out of range.
    # TODO(synk): fold the zero padding into the kernel (masked halo loads)
    # to save this extra HBM pass over the activations.
    Wp = W + 2 * pad
    Hp_pad = (n_rt + 1) * TH
    x_pad = jnp.pad(x_nchw.astype(compute_dtype),
                    ((0, 0), (0, 0), (pad, Hp_pad - H - pad), (pad, pad)))

    # Filter as a (Cout, K*K*Cin) matrix, contraction ordered (dy, dx, cin).
    w_mat = jnp.transpose(weight_oihw, (0, 2, 3, 1)).reshape(
        Cout, K * K * Cin).astype(compute_dtype)
    b_col = bias.reshape(Cout, 1).astype(jnp.float32)

    kernel = functools.partial(genconv_kernel, K=K)
    est = _per_step_vmem_bytes(Cin, Cout, K, TH, W, Wp, in_bytes, out_bytes)
    vmem_limit = int(min(64 * 1024 * 1024, max(32 * 1024 * 1024, 2 * est)))

    out_flat = pl.pallas_call(
        kernel,
        out_shape=jax.ShapeDtypeStruct((N, Cout, H * W), x_nchw.dtype),
        grid_spec=pltpu.PrefetchScalarGridSpec(
            num_scalar_prefetch=0,
            grid=(N, n_rt),
            in_specs=[
                # row block r and its +1 neighbour (bottom halo rows).
                pl.BlockSpec((1, Cin, TH, Wp), lambda n, r: (n, 0, r, 0)),
                pl.BlockSpec((1, Cin, TH, Wp), lambda n, r: (n, 0, r + 1, 0)),
                pl.BlockSpec((Cout, K * K * Cin), lambda n, r: (0, 0)),
                pl.BlockSpec((Cout, 1), lambda n, r: (0, 0)),
            ],
            out_specs=pl.BlockSpec((1, Cout, TH * W), lambda n, r: (n, 0, r)),
        ),
        compiler_params=pltpu.CompilerParams(
            dimension_semantics=("parallel", "parallel"),
            vmem_limit_bytes=vmem_limit,
        ),
    )(x_pad, x_pad, w_mat, b_col)

    # The kernel already produced NCHW layout; this reshape is contiguous/free.
    return out_flat.reshape(N, Cout, H, W)


if __name__ == "__main__":
    # Shapes consistent with GenConv(in_channels=4, out_channels=8, kernel_size=3)
    N, Cin, H, W = 2, 4, 16, 16
    Cout, K = 8, 3

    key = jax.random.PRNGKey(0)
    kx, kw, kb = jax.random.split(key, 3)
    x = jax.random.normal(kx, (N, Cin, H, W), dtype=jnp.float32)
    weight = jax.random.normal(kw, (Cout, Cin, K, K), dtype=jnp.float32) * 0.1
    bias = jax.random.normal(kb, (Cout,), dtype=jnp.float32) * 0.1

    fn = jax.jit(lambda a, b, c: genconv(a, b, c, kernel_size=K, row_tile=8))
    out = jax.block_until_ready(fn(x, weight, bias))
    assert out.shape == (N, Cout, H, W), out.shape

    def _ref(xa, wa):
        r = jax.lax.conv_general_dilated(
            xa, wa, window_strides=(1, 1), padding="SAME",
            dimension_numbers=("NCHW", "OIHW", "NCHW"),
        ) + bias[None, :, None, None]
        return jnp.where(r > 0, r, NEG_SLOPE * r)

    # Tight check against a bf16-rounded-operand reference (isolates kernel bugs
    # from expected bf16 quantization), plus a loose check vs full-f32 semantics.
    ref_bf = _ref(x.astype(jnp.bfloat16).astype(jnp.float32),
                  weight.astype(jnp.bfloat16).astype(jnp.float32))
    ref_f32 = _ref(x, weight)
    err_tight = float(jnp.max(jnp.abs(out - ref_bf)))
    err_loose = float(jnp.max(jnp.abs(out - ref_f32)))
    assert err_tight < 1e-3, err_tight
    assert err_loose < 5e-2, err_loose
    print("KERNEL_OK")
</pallas_src>

<mosaic_0001>
module attributes {stable_mosaic.version = 11 : i64} {
  func.func @genconv_kernel(%arg0: i32, %arg1: i32, %arg2: memref<1x4x8x18xbf16, #tpu.memory_space<vmem>>, %arg3: memref<1x4x8x18xbf16, #tpu.memory_space<vmem>>, %arg4: memref<8x36xbf16, #tpu.memory_space<vmem>>, %arg5: memref<8x1xf32, #tpu.memory_space<vmem>>, %arg6: memref<1x8x128xf32, #tpu.memory_space<vmem>>) attributes {dimension_semantics = [#tpu.dimension_semantics<parallel>, #tpu.dimension_semantics<parallel>], iteration_bounds = array<i64: 2, 2>, scalar_prefetch = 0 : i64, scratch_operands = 0 : i64, tpu.core_type = #tpu.core_type<tc>, window_params = [{transform_indices = @transform_0, window_bounds = array<i64: 1, 4, 8, 18>}, {transform_indices = @transform_1, window_bounds = array<i64: 1, 4, 8, 18>}, {pipeline_mode = #tpu.pipeline_mode<synchronous>, transform_indices = @transform_2, window_bounds = array<i64: 8, 36>}, {pipeline_mode = #tpu.pipeline_mode<synchronous>, transform_indices = @transform_3, window_bounds = array<i64: 8, 1>}, {transform_indices = @transform_4, window_bounds = array<i64: 1, 8, 128>}]} {
    %c0 = arith.constant 0 : index
    %c0_0 = arith.constant 0 : index
    %c0_1 = arith.constant 0 : index
    %c0_2 = arith.constant 0 : index
    %0 = vector.load %arg2[%c0, %c0_0, %c0_1, %c0_2] : memref<1x4x8x18xbf16, #tpu.memory_space<vmem>>, vector<1x4x8x18xbf16>
    %1 = vector.shape_cast %0 : vector<1x4x8x18xbf16> to vector<4x8x18xbf16>
    %c0_3 = arith.constant 0 : index
    %c0_4 = arith.constant 0 : index
    %c0_5 = arith.constant 0 : index
    %c0_6 = arith.constant 0 : index
    %2 = vector.load %arg3[%c0_3, %c0_4, %c0_5, %c0_6] : memref<1x4x8x18xbf16, #tpu.memory_space<vmem>>, vector<1x4x8x18xbf16>
    %3 = vector.shape_cast %2 : vector<1x4x8x18xbf16> to vector<4x8x18xbf16>
    %4 = vector.extract_strided_slice %3 {offsets = [0, 0, 0], sizes = [4, 2, 18], strides = [1, 1, 1]} : vector<4x8x18xbf16> to vector<4x2x18xbf16>
    %5 = tpu.concatenate %1, %4 in 1 : vector<4x8x18xbf16>, vector<4x2x18xbf16> -> vector<4x10x18xbf16>
    %6 = vector.extract_strided_slice %5 {offsets = [0, 0, 0], sizes = [4, 8, 16], strides = [1, 1, 1]} : vector<4x10x18xbf16> to vector<4x8x16xbf16>
    %7 = vector.shape_cast %6 : vector<4x8x16xbf16> to vector<4x128xbf16>
    %8 = vector.extract_strided_slice %5 {offsets = [0, 0, 1], sizes = [4, 8, 16], strides = [1, 1, 1]} : vector<4x10x18xbf16> to vector<4x8x16xbf16>
    %9 = vector.shape_cast %8 : vector<4x8x16xbf16> to vector<4x128xbf16>
    %10 = vector.extract_strided_slice %5 {offsets = [0, 0, 2], sizes = [4, 8, 16], strides = [1, 1, 1]} : vector<4x10x18xbf16> to vector<4x8x16xbf16>
    %11 = vector.shape_cast %10 : vector<4x8x16xbf16> to vector<4x128xbf16>
    %12 = vector.extract_strided_slice %5 {offsets = [0, 1, 0], sizes = [4, 8, 16], strides = [1, 1, 1]} : vector<4x10x18xbf16> to vector<4x8x16xbf16>
    %13 = vector.shape_cast %12 : vector<4x8x16xbf16> to vector<4x128xbf16>
    %14 = vector.extract_strided_slice %5 {offsets = [0, 1, 1], sizes = [4, 8, 16], strides = [1, 1, 1]} : vector<4x10x18xbf16> to vector<4x8x16xbf16>
    %15 = vector.shape_cast %14 : vector<4x8x16xbf16> to vector<4x128xbf16>
    %16 = vector.extract_strided_slice %5 {offsets = [0, 1, 2], sizes = [4, 8, 16], strides = [1, 1, 1]} : vector<4x10x18xbf16> to vector<4x8x16xbf16>
    %17 = vector.shape_cast %16 : vector<4x8x16xbf16> to vector<4x128xbf16>
    %18 = vector.extract_strided_slice %5 {offsets = [0, 2, 0], sizes = [4, 8, 16], strides = [1, 1, 1]} : vector<4x10x18xbf16> to vector<4x8x16xbf16>
    %19 = vector.shape_cast %18 : vector<4x8x16xbf16> to vector<4x128xbf16>
    %20 = vector.extract_strided_slice %5 {offsets = [0, 2, 1], sizes = [4, 8, 16], strides = [1, 1, 1]} : vector<4x10x18xbf16> to vector<4x8x16xbf16>
    %21 = vector.shape_cast %20 : vector<4x8x16xbf16> to vector<4x128xbf16>
    %22 = vector.extract_strided_slice %5 {offsets = [0, 2, 2], sizes = [4, 8, 16], strides = [1, 1, 1]} : vector<4x10x18xbf16> to vector<4x8x16xbf16>
    %23 = vector.shape_cast %22 : vector<4x8x16xbf16> to vector<4x128xbf16>
    %24 = tpu.concatenate %7, %9, %11, %13, %15, %17, %19, %21, %23 in 0 : vector<4x128xbf16>, vector<4x128xbf16>, vector<4x128xbf16>, vector<4x128xbf16>, vector<4x128xbf16>, vector<4x128xbf16>, vector<4x128xbf16>, vector<4x128xbf16>, vector<4x128xbf16> -> vector<36x128xbf16>
    %c0_7 = arith.constant 0 : index
    %c0_8 = arith.constant 0 : index
    %25 = vector.load %arg4[%c0_7, %c0_8] : memref<8x36xbf16, #tpu.memory_space<vmem>>, vector<8x36xbf16>
    %cst = arith.constant dense<0.000000e+00> : vector<8x128xf32>
    %26 = tpu.matmul %25, %24, %cst {dimension_numbers = #tpu.dot_dimension_numbers<[1], [0], [0], [1], [0, 0, 1, 1], [], []>} : vector<8x36xbf16>, vector<36x128xbf16>, vector<8x128xf32> -> vector<8x128xf32>
    %c0_9 = arith.constant 0 : index
    %c0_10 = arith.constant 0 : index
    %27 = vector.load %arg5[%c0_9, %c0_10] : memref<8x1xf32, #tpu.memory_space<vmem>>, vector<8x1xf32>
    %28 = vector.broadcast %27 : vector<8x1xf32> to vector<8x128xf32>
    %29 = arith.addf %26, %28 : vector<8x128xf32>
    %cst_11 = arith.constant 0.000000e+00 : f32
    %30 = vector.broadcast %cst_11 : f32 to vector<8x128xf32>
    %31 = arith.cmpf ogt, %29, %30 : vector<8x128xf32>
    %cst_12 = arith.constant 0.00999999977 : f32
    %32 = vector.broadcast %cst_12 : f32 to vector<8x128xf32>
    %33 = arith.mulf %32, %29 : vector<8x128xf32>
    %34 = arith.select %31, %29, %33 : vector<8x128xi1>, vector<8x128xf32>
    %35 = vector.shape_cast %34 : vector<8x128xf32> to vector<1x8x128xf32>
    %c0_13 = arith.constant 0 : index
    %c0_14 = arith.constant 0 : index
    %c0_15 = arith.constant 0 : index
    %36 = vector.load %arg6[%c0_13, %c0_14, %c0_15] : memref<1x8x128xf32, #tpu.memory_space<vmem>>, vector<1x8x128xf32>
    tpu.vector_store %arg6[%c0_13, %c0_14, %c0_15], %35 {strides = array<i32>} : memref<1x8x128xf32, #tpu.memory_space<vmem>>, vector<1x8x128xf32>,
    return
  }
  func.func @transform_0(%arg0: i32, %arg1: i32) -> (i32, i32, i32, i32) {
    %c0_i32 = arith.constant 0 : i32
    %c0_i32_0 = arith.constant 0 : i32
    %c0_i32_1 = arith.constant 0 : i32
    return %arg0, %c0_i32, %arg1, %c0_i32_0 : i32, i32, i32, i32
  }
  func.func @transform_1(%arg0: i32, %arg1: i32) -> (i32, i32, i32, i32) {
    %c1_i32 = arith.constant 1 : i32
    %0 = arith.addi %arg1, %c1_i32 : i32
    %c0_i32 = arith.constant 0 : i32
    %c0_i32_0 = arith.constant 0 : i32
    %c0_i32_1 = arith.constant 0 : i32
    return %arg0, %c0_i32, %0, %c0_i32_0 : i32, i32, i32, i32
  }
  func.func @transform_2(%arg0: i32, %arg1: i32) -> (i32, i32) {
    %c0_i32 = arith.constant 0 : i32
    %c0_i32_0 = arith.constant 0 : i32
    %c0_i32_1 = arith.constant 0 : i32
    return %c0_i32, %c0_i32_0 : i32, i32
  }
  func.func @transform_3(%arg0: i32, %arg1: i32) -> (i32, i32) {
    %c0_i32 = arith.constant 0 : i32
    %c0_i32_0 = arith.constant 0 : i32
    %c0_i32_1 = arith.constant 0 : i32
    return %c0_i32, %c0_i32_0 : i32, i32
  }
  func.func @transform_4(%arg0: i32, %arg1: i32) -> (i32, i32, i32) {
    %c0_i32 = arith.constant 0 : i32
    %c0_i32_0 = arith.constant 0 : i32
    return %arg0, %c0_i32, %arg1 : i32, i32, i32
  }
}

</mosaic_0001>

<bundles_post_ra>
// kernel: _lambda_.1
= control target key start
LH: loop header
LB: loop body
LE: loop exit
PB: predicated region body
PF: predicated region fallthrough
CT: control target
= control target key end

     0   :  { %s2002_s15 = smov 0   ;;  %s2004_s16 = smov 0   ;;  %s2699_s0 = inlined_call_operand.vmem [shape: bf16[2,4,24,18], index: 0, kind: input, shape index: {}, may-alias: {0,1}]   ;;  %s2700_s1 = inlined_call_operand.vmem [shape: bf16[2,4,24,18], index: 1, kind: input, shape index: {}, may-alias: {0,1}]   ;;  %s2701_s2 = inlined_call_operand.vmem [shape: bf16[8,36], index: 2, kind: input, shape index: {}]   ;;  %s2702_s3 = inlined_call_operand.vmem [shape: f32[8,1], index: 3, kind: input, shape index: {}]   ;;  %s2703_s4 = inlined_call_operand.vmem [shape: f32[2,8,256], index: 4, kind: output, shape index: {}]  }
   0x1   :  { %s2006_s17 = smov 0   ;;  %s2008_s18 = smov 0  }
   0x2   :  { %s2010_s19 = smov 0   ;;  %s2012_s20 = smov 0  }
   0x3   :  { %s2014_s21 = smov 0   ;;  %s2016_s22 = smov 0  }
   0x4   :  { %s2018_s23 = smov 0  }
   0x5 LB: > { %s23_s24 = sadd.s32 1, %s1953_s21  ;;  %s26_s25 = sadd.s32 1, %s1957_s22  ;;  %s1961_s23 = sphi %s2018_s23, %s14_s23   ;;  %s1957_s22 = sphi %s2016_s22, %s2721_s22   ;;  %s1953_s21 = sphi %s2014_s21, %s2720_s21   ;;  %s1949_s20 = sphi %s2012_s20, %s2719_s20   ;;  %s1945_s19 = sphi %s2010_s19, %s2718_s19   ;;  %s1941_s18 = sphi %s2008_s18, %s2717_s18   ;;  %s1937_s17 = sphi %s2006_s17, %s2716_s17   ;;  %s1933_s16 = sphi %s2004_s16, %s2715_s16   ;;  %s1929_s15 = sphi %s2002_s15, %s2714_s15  }
   0x6   : > { %p24_p0 = scmp.ge.s32.totalorder %s23_s24, 2  ;;  %p42_p1 = scmp.ne.s32.totalorder %s1941_s18, %s1937_s17 }
   0x7   : > { %p43_p2 = scmp.eq.s32.totalorder %s1961_s23, 0  ;;  %s35_s5 = sadd.s32 1, %s1941_s18 }
   0x8   : > { %s2052_s26 = scalar_select %p24_p0, 0, %s23_s24  }
   0x9   : > { %s2723_s25 = smov (!%p24_p0, %s26_s25), %s1957_s22  ;;  %p2057_p3 = por %p43_p2, %p42_p1 }
   0xa   : > { %p28_p4 = scmp.ge.s32.totalorder %s2723_s25, 2  ;;  %s59_s28 = sadd.s32 1, %s2052_s26 }
   0xb   : > { %s31_s29 = ssub.s32 %s1953_s21, %s2052_s26  ;;  %s61_s30 = ssub.s32 %s23_s24, %s59_s28 }
   0xc   : > { %s2725_s25 = smov (%p28_p4, %s2723_s25), 0  ;;  %p72_p5 = scmp.ne.s32.totalorder %s1933_s16, %s1929_s15 }
   0xd   : > { %s30_s6 = ssub.s32 %s1957_s22, %s2725_s25  ;;  %s65_s7 = sadd.s32 1, %s1933_s16 }
   0xe   : > { %s32_s8 = sor.u32 %s31_s29, %s30_s6  ;;  %s62_s9 = sor.u32 %s61_s30, %s30_s6 }
   0xf   : > { %p33_p6 = scmp.eq.s32.totalorder %s32_s8, 0  ;;  %p63_p7 = scmp.eq.s32.totalorder %s62_s9, 0 }
  0x10   : > { %p2074_p8 = por %p72_p5, %p43_p2  ;;  %p1763_p9 = scmp.ge.s32.totalorder %s1961_s23, 4 }
  0x11   : > { %s2079_s11 = scalar_select %p33_p6, %s1941_s18, %s35_s5  }
  0x12   : > { %s2082_s12 = scalar_select %p63_p7, %s1933_s16, %s65_s7  }
  0x13   : > { %174 = sbr.rel (%p1763_p9) target bundleno = 44 (0x2c), region = 24 }
  0x1a   : > { %177 = sbr.rel (!%p2057_p3) target bundleno = 35 (0x23), region = 28  ;;  %s179_s13 = sand.u32 (%p2057_p3), 1, %s1941_s18  }
  0x1b   : > { %s1798_s14 = smul.u32 (%p2057_p3), 12, %s1957_s22  ;;  %s1764_s24 = sshll.u32 (%p2057_p3), %s179_s13, 4 }
  0x1c   : > { %s181_s7 = scalar_lea.vmem (%p2057_p3), [#allocation2], %s1764_s24 }
  0x1d   : > { %s183_s28 = sadd.s32 (%p2057_p3), %s1953_s21, %s1798_s14 }
  0x1e   : > { %s1765_s29 = sshll.u32 (%p2057_p3), %s183_s28, 2 }
  0x1f   : > { %s185_s5 = scalar_lea.vmem (%p2057_p3), %s2699_s0, %s1765_s29 }
  0x20   : > { %v201_v0 = vld [vmem:[%s185_s5] sm:$0xf] (%p2057_p3)  ;;  %v203_v1 = vld [vmem:[%s185_s5 + $0xc] sm:$0xf] (%p2057_p3)  ;;  %v205_v2 = vld [vmem:[%s185_s5 + $0x18] sm:$0xf] (%p2057_p3) }
  0x21   : > { %202 = vst [vmem:[%s181_s7] sm:$0xf] %v201_v0  ;;  %204 = vst [vmem:[%s181_s7 + $0x4] sm:$0xf] %v203_v1  ;;  %v207_v3 = vld [vmem:[%s185_s5 + $0x24] sm:$0xf] }
  0x22   : > { %206 = vst [vmem:[%s181_s7 + $0x8] sm:$0xf] %v205_v2  ;;  %208 = vst [vmem:[%s181_s7 + $0xc] sm:$0xf] %v207_v3 }
  0x23 PF: > { %239 = sbr.rel (!%p2074_p8) target bundleno = 44 (0x2c), region = 69  ;;  %s241_s27 = sand.u32 (%p2074_p8), 1, %s1933_s16  }
  0x24   : > { %s1686_s8 = smul.u32 (%p2074_p8), 12, %s1957_s22  ;;  %s1766_s9 = sshll.u32 (%p2074_p8), %s241_s27, 4 }
  0x25   : > { %s243_s30 = scalar_lea.vmem (%p2074_p8), [#allocation3], %s1766_s9 }
  0x26   : > { %s1687_s13 = sadd.s32 (%p2074_p8), %s1953_s21, %s1686_s8 }
  0x27   : > { %s1767_s14 = sshll.u32 (%p2074_p8), %s1687_s13, 2 }
  0x28   : > { %s1689_s24 = scalar_lea.vmem (%p2074_p8), %s2700_s1, %s1767_s14 }
  0x29   : > { %v1768_v4 = vld [vmem:[%s1689_s24 + $0x4] sm:$0xf] (%p2074_p8)  ;;  %v1769_v5 = vld [vmem:[%s1689_s24 + $0x10] sm:$0xf] (%p2074_p8)  ;;  %v1770_v6 = vld [vmem:[%s1689_s24 + $0x1c] sm:$0xf] (%p2074_p8) }
  0x2a   : > { %265 = vst [vmem:[%s243_s30] sm:$0xf] %v1768_v4  ;;  %267 = vst [vmem:[%s243_s30 + $0x4] sm:$0xf] %v1769_v5  ;;  %v1771_v7 = vld [vmem:[%s1689_s24 + $0x28] sm:$0xf] }
  0x2b   : > { %269 = vst [vmem:[%s243_s30 + $0x8] sm:$0xf] %v1770_v6  ;;  %271 = vst [vmem:[%s243_s30 + $0xc] sm:$0xf] %v1771_v7 }
  0x2c PF: > { %p1772_p10 = scmp.ge.s32.totalorder %s1961_s23, 1  ;;  %p301_p11 = scmp.lt.s32.totalorder %s1961_s23, 5 }
  0x2e   : > { %p302_p12 = pnand %p1772_p10, %p301_p11 }
  0x2f   : > { %s308_s10 = sand.u32 (!%p302_p12), 1, %s1937_s17   ;;  %s315_s6 = sand.u32 (!%p302_p12), 1, %s1929_s15   ;;  %v1963_v8 = vmov (!%p302_p12), 0   ;;  %vm377_vm0 = vcmask (!%p302_p12), 1043456   ;;  %v1966_v36 = vmov (!%p302_p12), 1983009808   ;;  %v394_v38 = vlaneseq (!%p302_p12) }
  0x30   : > { %305 = sbr.rel (%p302_p12) target bundleno = 612 (0x264), region = 110  ;;  %s1773_s5 = sshll.u32 (!%p302_p12), %s308_s10, 4  ;;  %1885 = vset.pattern.permute.xlu1 (!%p302_p12), %v1963_v8  ;;  %1886 = vset.pattern.permute.xlu0 (!%p302_p12), %v1963_v8  ;;  %v392_v37 = vunpack.c.l.s4 (!%p302_p12), %v1966_v36  ;;  %v1967_v42 = vmov (!%p302_p12), 1934713408   ;;  %vm496_vm1 = vcmask (!%p302_p12), 130048   ;;  %vm500_vm2 = vcmask (!%p302_p12), 261120  }
  0x31   : > { %s1774_s7 = sshll.u32 (!%p302_p12), %s315_s6, 4  ;;  %s310_s27 = scalar_lea.vmem (!%p302_p12), [#allocation2], %s1773_s5  ;;  %v395_v41 = vshrl.u32 (!%p302_p12), %v394_v38, 7  ;;  %v409_v43 = vunpack.c.l.s4 (!%p302_p12), %v1967_v42  ;;  %vm503_vm3 = vcmask (!%p302_p12), 392192   ;;  %vm506_vm4 = vcmask (!%p302_p12), 523264  }
  0x32   : > { %v359_v9 = vld [vmem:[%s310_s27 + $0x8] sm:$0xf] (!%p302_p12)  ;;  %s317_s8 = scalar_lea.vmem (!%p302_p12), [#allocation3], %s1774_s7  ;;  %v357_v11 = vld [vmem:[%s310_s27] sm:$0xf] (!%p302_p12)  ;;  %s1964_s17 = smov (!%p302_p12), 127   ;;  %v393_v40 = vunpack.c.0.s8 (!%p302_p12), %v392_v37 }
  0x33   : > { %v1887_v10 = vld [vmem:[%s317_s8 + $0x8] ss:$0 sps:$4 sm:$0xff] (!%p302_p12)   ;;  %v1888_v13 = vld [vmem:[%s317_s8] ss:$0 sps:$4 sm:$0xff] (!%p302_p12)   ;;  %v360_v14 = vld [vmem:[%s310_s27 + $0xc] sm:$0xf] (!%p302_p12)  ;;  %v410_v51 = vunpack.c.0.s8 (!%p302_p12), %v409_v43 }
  0x34   : > { %v2108_v12 = vsel (!%p302_p12), %vm377_vm0, %v359_v9, %v1887_v10  ;;  %v1889_v15 = vld [vmem:[%s317_s8 + $0xc] ss:$0 sps:$4 sm:$0xff] (!%p302_p12)   ;;  %v358_v16 = vld [vmem:[%s310_s27 + $0x4] sm:$0xf] (!%p302_p12)  ;;  %v380_v17 = vsel (!%p302_p12), %vm377_vm0, %v357_v11, %v1888_v13  ;;  %s1965_s15 = smov (!%p302_p12), 126   ;;  %v2130_v44 = vsub.s32 (!%p302_p12), %v393_v40, %v395_v41  ;;  %s1968_s9 = smov (!%p302_p12), 16  }
  0x35   : > { %526 = vrot.lane.b32.xlu1 (!%p302_p12), %v2108_v12, %s1964_s17  ;;  %v1890_v18 = vld [vmem:[%s317_s8 + $0x4] ss:$0 sps:$4 sm:$0xff] (!%p302_p12)   ;;  %522 = vrot.lane.b32.xlu0 (!%p302_p12), %v380_v17, %s1964_s17  ;;  %v389_v19 = vsel (!%p302_p12), %vm377_vm0, %v360_v14, %v1889_v15  ;;  %v782_v22 = vshll.u32 (!%p302_p12), %v380_v17, 16  ;;  %v780_v26 = vshrl.u32 (!%p302_p12), %v380_v17, 16  ;;  %v794_v28 = vshll.u32 (!%p302_p12), %v2108_v12, 16  ;;  %s1969_s13 = smov (!%p302_p12), 32  }
  0x36   : > { %v383_v20 = vsel (!%p302_p12), %vm377_vm0, %v358_v16, %v1890_v18  ;;  %v800_v25 = vshll.u32 (!%p302_p12), %v389_v19, 16  ;;  %v798_v30 = vshrl.u32 (!%p302_p12), %v389_v19, 16  ;;  %v792_v33 = vshrl.u32 (!%p302_p12), %v2108_v12, 16  ;;  %s1970_s14 = smov (!%p302_p12), 48   ;;  %s1971_s28 = smov (!%p302_p12), 64  }
  0x37   : > { %v788_v21 = vshll.u32 %v383_v20, 16  ;;  %v786_v23 = vshrl.u32 %v383_v20, 16  ;;  %v784_v27 = vrot.slane %v782_v22, 1  ;;  %v796_v34 = vrot.slane %v794_v28, 1  ;;  %s1972_s29 = smov 80   ;;  %s1973_s24 = smov 96  }
  0x38   : > { %v802_v31 = vrot.slane %v800_v25, 1  ;;  %v1184_v45 = vrot.slane %v383_v20, 1  ;;  %v2135_v46 = vrot.slane %v380_v17, %v2130_v44  ;;  %v2139_v47 = vrot.slane %v2108_v12, %v2130_v44  ;;  %s1974_s30 = smov 112   ;;  %p348_p13 = scmp.lt.s32.totalorder %s1949_s20, 1 }
  0x39   : > { %528 = vrot.lane.b32.xlu1 %v389_v19, %s1964_s17  ;;  %524 = vrot.lane.b32.xlu0 %v383_v20, %s1964_s17  ;;  %v790_v24 = vrot.slane %v788_v21, 1  ;;  %v785_v32 = vor.u32 %v784_v27, %v780_v26  ;;  %v797_v39 = vor.u32 %v796_v34, %v792_v33  ;;  %v2142_v48 = vrot.slane %v383_v20, %v2130_v44  ;;  %p350_p0 = scmp.lt.s32.totalorder %s1945_s19, 1 }
  0x3a   : > { %v803_v35 = vor.u32 %v802_v31, %v798_v30  ;;  %v2145_v49 = vrot.slane %v389_v19, %v2130_v44  ;;  %v1183_v50 = vrot.slane %v380_v17, 1  ;;  %v1186_v56 = vrot.slane %v389_v19, 1  ;;  %s2727_s20 = smov (!%p348_p13, %s1949_s20), 1 }
  0x3b   : > { %v791_v29 = vor.u32 %v790_v24, %v786_v23  ;;  %v811_v53 = vrot.slane %v785_v32, %v2130_v44  ;;  %v819_v55 = vrot.slane %v797_v39, %v2130_v44  ;;  %v406_v57 = vcombine.low %v2135_v46, %v2139_v47  ;;  %s2729_s19 = smov (!%p350_p0, %s1945_s19), 1  ;;  %s1775_s27 = sshll.u32 %s2727_s20, 1 }
  0x3c   : > { %v853_v54 = vrot.slane %v803_v35, %v2130_v44  ;;  %v440_v58 = vcombine.low %v2142_v48, %v2145_v49  ;;  %v1185_v61 = vrot.slane %v2108_v12, 1  ;;  %v2159_v62 = vsub.s32 %v410_v51, %v395_v41  ;;  %s353_s8 = sadd.s32 %s1775_s27, %s2729_s19 }
  0x3d   : > { %653 = vrot.lane.b32.xlu1 %v383_v20, %s1965_s15  ;;  %651 = vrot.lane.b32.xlu0 %v380_v17, %s1965_s15  ;;  %v845_v52 = vrot.slane %v791_v29, %v2130_v44  ;;  %v820_v60 = vcombine.low %v811_v53, %v819_v55  ;;  %v1228_v11 = vrot.slane %v1184_v45, %v2130_v44  ;;  %vm509_vm5 = vcmask 654336  }
  0x3e   : > { %v2163_v63 = vrot.slane %v406_v57, %v2159_v62  ;;  %v2166_v0 = vrot.slane %v440_v58, %v2159_v62  ;;  %v1236_v13 = vrot.slane %v1186_v56, %v2130_v44  ;;  %v1202_v14 = vrot.slane %v1185_v61, %v2130_v44 }
  0x3f   : > { %v854_v59 = vcombine.low %v845_v52, %v853_v54  ;;  %v2170_v1 = vrot.slane %v820_v60, %v2159_v62  ;;  %v821_v18 = vcombine.high %v811_v53, %v819_v55  ;;  %v855_v22 = vcombine.high %v845_v52, %v853_v54 }
  0x40   : > { %v461_v3 = vshrl.u32 %v2163_v63, 16  ;;  %v462_v4 = vshrl.u32 %v2166_v0, 16  ;;  %v422_v9 = vcombine.high %v2163_v63, %v1963_v8  ;;  %v456_v10 = vcombine.high %v2166_v0, %v1963_v8 }
  0x41   : > { %657 = vrot.lane.b32.xlu1 %v389_v19, %s1965_s15  ;;  %655 = vrot.lane.b32.xlu0 %v2108_v12, %s1965_s15  ;;  %v2173_v2 = vrot.slane %v854_v59, %v2159_v62  ;;  %v875_v5 = vshrl.u32 %v2170_v1, 16  ;;  %v1194_v12 = vrot.slane %v1183_v50, %v2130_v44  ;;  %v836_v16 = vcombine.high %v2170_v1, %v1963_v8 }
  0x42   : > { %v463_v7 = vpack.i.b16 %v462_v4, %v461_v3  ;;  %v466_v19 = vpack.i.b16 %v456_v10, %v422_v9  ;;  %v467_v20 = vshrl.u32 %v422_v9, 16  ;;  %v468_v21 = vshrl.u32 %v456_v10, 16 }
  0x43   : > { %v876_v6 = vshrl.u32 %v2173_v2, 16  ;;  %v870_v17 = vcombine.high %v2173_v2, %v1963_v8  ;;  %v1237_v23 = vcombine.low %v1228_v11, %v1236_v13  ;;  %v1203_v24 = vcombine.low %v1194_v12, %v1202_v14 }
  0x44   : > { %v407_v25 = vcombine.high %v2135_v46, %v2139_v47  ;;  %v881_v27 = vshrl.u32 %v836_v16, 16  ;;  %v469_v30 = vpack.i.b16 %v468_v21, %v467_v20  ;;  %v835_v31 = vrot.slane %v821_v18, %v2159_v62 }
  0x45   : > { %1056 = vrot.lane.b32.xlu1 %v791_v29, %s1965_s15  ;;  %1054 = vrot.lane.b32.xlu0 %v785_v32, %s1965_s15  ;;  %v877_v15 = vpack.i.b16 %v876_v6, %v875_v5  ;;  %v880_v26 = vpack.i.b16 %v870_v17, %v836_v16  ;;  %v882_v28 = vshrl.u32 %v870_v17, 16  ;;  %v2205_v33 = vrot.slane %v1203_v24, %v2159_v62 }
  0x46   : > { %v2211_v37 = vrot.slane %v1237_v23, %v2159_v62  ;;  %v887_v46 = vshrl.u32 %v835_v31, 16  ;;  %vm1976_vm6 = vmmov 0   ;;  %vm512_vm7 = vcmask 785408  }
  0x47   : > { %v883_v34 = vpack.i.b16 %v882_v28, %v881_v27  ;;  %v1258_v40 = vshrl.u32 %v2205_v33, 16  ;;  %v1219_v51 = vcombine.high %v2205_v33, %v1963_v8  ;;  %vm515_vm8 = vcmask 916480  }
  0x48   : > { %v1259_v41 = vshrl.u32 %v2211_v37, 16  ;;  %v1253_v53 = vcombine.high %v2211_v37, %v1963_v8  ;;  %vm1578_vm9 = vcmask 1041408   ;;  %vm1583_vm10 = vcmask 1045504  }
  0x49   : > { %1060 = vrot.lane.b32.xlu1 %v803_v35, %s1965_s15  ;;  %1058 = vrot.lane.b32.xlu0 %v797_v39, %s1965_s15  ;;  %v1264_v54 = vshrl.u32 %v1219_v51, 16  ;;  %vm1601_vm11 = vcmask 293888  }
  0x4a   : > { %v1260_v47 = vpack.i.b16 %v1259_v41, %v1258_v40  ;;  %v1265_v57 = vshrl.u32 %v1253_v53, 16 }
  0x4c   : > { %v1266_v6 = vpack.i.b16 %v1265_v57, %v1264_v54 }
  0x4d   : > { %927 = vrot.lane.b32.xlu1 %v791_v29, %s1964_s17  ;;  %925 = vrot.lane.b32.xlu0 %v785_v32, %s1964_s17  ;;  %v441_v29 = vcombine.high %v2142_v48, %v2145_v49  ;;  %v869_v32 = vrot.slane %v855_v22, %v2159_v62  ;;  %v1204_v49 = vcombine.high %v1194_v12, %v1202_v14 }
  0x4e   : > { %v837_v12 = vcombine.high %v835_v31, %v1963_v8 }
  0x4f   : > { %v455_v36 = vrot.slane %v441_v29, %v2159_v62  ;;  %v888_v48 = vshrl.u32 %v869_v32, 16  ;;  %v1218_v58 = vrot.slane %v1204_v49, %v2159_v62 }
  0x51   : > { %931 = vrot.lane.b32.xlu1 %v803_v35, %s1964_s17  ;;  %929 = vrot.lane.b32.xlu0 %v797_v39, %s1964_s17  ;;  %v421_v35 = vrot.slane %v407_v25, %v2159_v62  ;;  %v886_v39 = vpack.i.b16 %v869_v32, %v835_v31  ;;  %v457_v3 = vcombine.high %v455_v36, %v1963_v8  ;;  %v1270_v22 = vshrl.u32 %v1218_v58, 16 }
  0x52   : > { %v2234_v4 = vcombine.high %v1218_v58, %v1963_v8  ;;  %v1257_v25 = vpack.i.b16 %v2211_v37, %v2205_v33 }
  0x53   : > { %v472_v42 = vpack.i.b16 %v455_v36, %v421_v35  ;;  %v473_v43 = vshrl.u32 %v421_v35, 16  ;;  %v423_v60 = vcombine.high %v421_v35, %v1963_v8  ;;  %v480_v9 = vshrl.u32 %v457_v3, 16 }
  0x54   : > { %v1276_v14 = vshrl.u32 %v2234_v4, 16 }
  0x55   : > { %1310 = vrot.lane.b32.xlu1 %v1184_v45, %s1964_s17  ;;  %1308 = vrot.lane.b32.xlu0 %v1183_v50, %s1964_s17 }
  0x59   : > { %1314 = vrot.lane.b32.xlu1 %v1186_v56, %s1964_s17  ;;  %1312 = vrot.lane.b32.xlu0 %v1185_v61, %s1964_s17  ;;  %s1776_s17 = sshll.u32 %s353_s8, 3 }
  0x5d   : > { %1439 = vrot.lane.b32.xlu1 %v1184_v45, %s1965_s15  ;;  %1437 = vrot.lane.b32.xlu0 %v1183_v50, %s1965_s15  ;;  %v474_v45 = vshrl.u32 %v455_v36, 16  ;;  %v1238_v50 = vcombine.high %v1228_v11, %v1236_v13  ;;  %v478_v11 = vpack.i.b16 %v457_v3, %v423_v60  ;;  %v871_v13 = vcombine.high %v869_v32, %v1963_v8 }
  0x5f   : > { %v475_v52 = vpack.i.b16 %v474_v45, %v473_v43  ;;  %v1252_v59 = vrot.slane %v1238_v50, %v2159_v62  ;;  %v892_v18 = vpack.i.b16 %v871_v13, %v837_v12  ;;  %v894_v20 = vshrl.u32 %v871_v13, 16 }
  0x61   : > { %1443 = vrot.lane.b32.xlu1 %v1186_v56, %s1965_s15  ;;  %1441 = vrot.lane.b32.xlu0 %v1185_v61, %s1965_s15  ;;  %v889_v56 = vpack.i.b16 %v888_v48, %v887_v46  ;;  %v1263_v61 = vpack.i.b16 %v1253_v53, %v1219_v51  ;;  %v2237_v5 = vcombine.high %v1252_v59, %v1963_v8  ;;  %v1271_v23 = vshrl.u32 %v1252_v59, 16 }
  0x62   : > { %v1269_v21 = vpack.i.b16 %v1252_v59, %v1218_v58 }
  0x63   : > { %v1275_v10 = vpack.i.b16 %v2237_v5, %v2234_v4 }
  0x65   : > { %482 = vrot.lane.b32.xlu1 %v463_v7, %s1968_s9  ;;  %896 = vrot.lane.b32.xlu0 %v877_v15, %s1968_s9  ;;  %v479_v7 = vshrl.u32 %v423_v60, 16  ;;  %v1277_v15 = vshrl.u32 %v2237_v5, 16 }
  0x67   : > { %v481_v16 = vpack.i.b16 %v480_v9, %v479_v7  ;;  %v2248_v17 = vpack.i.b16 %v1277_v15, %v1276_v14 }
  0x69   : > { %484 = vrot.lane.b32.xlu1 %v466_v19, %s1969_s13  ;;  %898 = vrot.lane.b32.xlu0 %v880_v26, %s1969_s13  ;;  %v893_v19 = vshrl.u32 %v837_v12, 16  ;;  %v1272_v26 = vpack.i.b16 %v1271_v23, %v1270_v22 }
  0x6b   : > { %v895_v24 = vpack.i.b16 %v894_v20, %v893_v19 }
  0x6d   : > { %486 = vrot.lane.b32.xlu1 %v469_v30, %s1970_s14  ;;  %900 = vrot.lane.b32.xlu0 %v883_v34, %s1970_s14 }
  0x71   : > { %902 = vrot.lane.b32.xlu1 %v886_v39, %s1971_s28  ;;  %488 = vrot.lane.b32.xlu0 %v472_v42, %s1971_s28 }
  0x75   : > { %1279 = vrot.lane.b32.xlu1 %v1260_v47, %s1968_s9  ;;  %490 = vrot.lane.b32.xlu0 %v475_v52, %s1972_s29 }
  0x79   : > { %904 = vrot.lane.b32.xlu1 %v889_v56, %s1972_s29  ;;  %1281 = vrot.lane.b32.xlu0 %v1263_v61, %s1969_s13 }
  0x7d   : > { %1283 = vrot.lane.b32.xlu1 %v1266_v6, %s1970_s14  ;;  %492 = vrot.lane.b32.xlu0 %v478_v11, %s1973_s24 }
  0x81   : > { %494 = vrot.lane.b32.xlu1 %v481_v16, %s1974_s30  ;;  %906 = vrot.lane.b32.xlu0 %v892_v18, %s1973_s24 }
  0x85   : > { %1285 = vrot.lane.b32.xlu1 %v1269_v21, %s1971_s28  ;;  %908 = vrot.lane.b32.xlu0 %v895_v24, %s1974_s30 }
  0x89   : > { %1287 = vrot.lane.b32.xlu1 %v1272_v26, %s1972_s29 }
  0xa7   : > { %v527_v27 = vpop.permute.xlu1 %526  ;;  %v523_v29 = vpop.permute.xlu0 %522 }
  0xa8   : > { %v545_v28 = vrot.slane %v527_v27, %v2130_v44  ;;  %v537_v30 = vrot.slane %v523_v29, %v2130_v44 }
  0xaa   : > { %v546_v34 = vcombine.low %v537_v30, %v545_v28  ;;  %v547_v36 = vcombine.high %v537_v30, %v545_v28 }
  0xab   : > { %v529_v31 = vpop.permute.xlu1 %528  ;;  %v525_v35 = vpop.permute.xlu0 %524 }
  0xac   : > { %v579_v32 = vrot.slane %v529_v31, %v2130_v44  ;;  %v571_v39 = vrot.slane %v525_v35, %v2130_v44  ;;  %v2263_v43 = vrot.slane %v546_v34, %v2159_v62  ;;  %v2266_v46 = vrot.slane %v547_v36, %v2159_v62 }
  0xae   : > { %v580_v41 = vcombine.low %v571_v39, %v579_v32  ;;  %v581_v42 = vcombine.high %v571_v39, %v579_v32  ;;  %v601_v56 = vshrl.u32 %v2263_v43, 16  ;;  %v562_v27 = vcombine.high %v2263_v43, %v1963_v8 }
  0xaf   : > { %v654_v40 = vpop.permute.xlu1 %653  ;;  %v652_v45 = vpop.permute.xlu0 %651  ;;  %v613_v34 = vshrl.u32 %v2266_v46, 16 }
  0xb0   : > { %v2269_v47 = vrot.slane %v580_v41, %v2159_v62  ;;  %v595_v48 = vrot.slane %v581_v42, %v2159_v62  ;;  %v700_v50 = vrot.slane %v654_v40, %v2130_v44  ;;  %v666_v58 = vrot.slane %v652_v45, %v2130_v44 }
  0xb2   : > { %v612_v52 = vpack.i.b16 %v595_v48, %v2266_v46  ;;  %v602_v53 = vshrl.u32 %v2269_v47, 16  ;;  %v596_v21 = vcombine.high %v2269_v47, %v1963_v8  ;;  %v614_v28 = vshrl.u32 %v595_v48, 16 }
  0xb3   : > { %v658_v49 = vpop.permute.xlu1 %657  ;;  %v656_v54 = vpop.permute.xlu0 %655 }
  0xb4   : > { %v708_v51 = vrot.slane %v658_v49, %v2130_v44  ;;  %v674_v61 = vrot.slane %v656_v54, %v2130_v44  ;;  %628 = vrot.lane.b32.xlu0 %v612_v52, %s1971_s28  ;;  %v603_v6 = vpack.i.b16 %v602_v53, %v601_v56  ;;  %v606_v32 = vpack.i.b16 %v596_v21, %v562_v27 }
  0xb5   : > { %v615_v45 = vpack.i.b16 %v614_v28, %v613_v34  ;;  %v597_v53 = vcombine.high %v595_v48, %v1963_v8 }
  0xb6   : > { %v709_v59 = vcombine.low %v700_v50, %v708_v51  ;;  %v710_v60 = vcombine.high %v700_v50, %v708_v51  ;;  %v675_v11 = vcombine.low %v666_v58, %v674_v61  ;;  %v676_v12 = vcombine.high %v666_v58, %v674_v61 }
  0xb7   : > { %v1057_v3 = vpop.permute.xlu1 %1056  ;;  %v1055_v13 = vpop.permute.xlu0 %1054 }
  0xb8   : > { %v2283_v7 = vrot.slane %v709_v59, %v2159_v62  ;;  %v724_v9 = vrot.slane %v710_v60, %v2159_v62  ;;  %v2287_v14 = vrot.slane %v675_v11, %v2159_v62  ;;  %v690_v15 = vrot.slane %v676_v12, %v2159_v62  ;;  %622 = vrot.lane.b32.xlu0 %v603_v6, %s1968_s9 }
  0xb9   : > { %v2305_v29 = vrot.slane %v1057_v3, %v2130_v44  ;;  %v2308_v30 = vrot.slane %v1055_v13, %v2130_v44  ;;  %v563_v60 = vcombine.high %v2266_v46, %v1963_v8 }
  0xba   : > { %v731_v16 = vshrl.u32 %v2283_v7, 16  ;;  %v741_v19 = vpack.i.b16 %v724_v9, %v690_v15  ;;  %v730_v20 = vshrl.u32 %v2287_v14, 16  ;;  %v691_v35 = vcombine.high %v2287_v14, %v1963_v8 }
  0xbb   : > { %v1061_v18 = vpop.permute.xlu1 %1060  ;;  %v1059_v23 = vpop.permute.xlu0 %1058  ;;  %v725_v36 = vcombine.high %v2283_v7, %v1963_v8  ;;  %v742_v49 = vshrl.u32 %v690_v15, 16  ;;  %v743_v50 = vshrl.u32 %v724_v9, 16  ;;  %v2337_v61 = vcombine.high %v690_v15, %v1963_v8 }
  0xbc   : > { %v2296_v22 = vrot.slane %v1061_v18, %v2130_v44  ;;  %v2299_v24 = vrot.slane %v1059_v23, %v2130_v44  ;;  %757 = vrot.lane.b32.xlu1 %v741_v19, %s1971_s28  ;;  %v732_v26 = vpack.i.b16 %v731_v16, %v730_v20  ;;  %v2340_v3 = vcombine.high %v724_v9, %v1963_v8 }
  0xbd   : > { %v735_v52 = vpack.i.b16 %v725_v36, %v691_v35  ;;  %v744_v59 = vpack.i.b16 %v743_v50, %v742_v49  ;;  %v618_v6 = vpack.i.b16 %v597_v53, %v563_v60  ;;  %v736_v11 = vshrl.u32 %v691_v35, 16 }
  0xbe   : > { %751 = vrot.lane.b32.xlu0 %v732_v26, %s1968_s9  ;;  %v1112_v39 = vcombine.low %v2305_v29, %v2296_v22  ;;  %v1078_v40 = vcombine.low %v2308_v30, %v2299_v24  ;;  %v737_v12 = vshrl.u32 %v725_v36, 16  ;;  %v747_v46 = vpack.i.b16 %v2340_v3, %v2337_v61 }
  0xbf   : > { %v2310_v31 = vpop.permute.xlu1 %927  ;;  %v926_v41 = vpop.permute.xlu0 %925  ;;  %v608_v15 = vshrl.u32 %v596_v21, 16  ;;  %v607_v19 = vshrl.u32 %v562_v27, 16  ;;  %v620_v26 = vshrl.u32 %v597_v53, 16  ;;  %v1113_v36 = vcombine.high %v2305_v29, %v2296_v22 }
  0xc0   : > { %624 = vrot.lane.b32.xlu1 %v606_v32, %s1969_s13  ;;  %v2328_v54 = vrot.slane %v1112_v39, %v2159_v62  ;;  %v2331_v56 = vrot.slane %v1078_v40, %v2159_v62  ;;  %v738_v23 = vpack.i.b16 %v737_v12, %v736_v11  ;;  %v619_v32 = vshrl.u32 %v563_v60, 16 }
  0xc1   : > { %v609_v35 = vpack.i.b16 %v608_v15, %v607_v19  ;;  %v1079_v40 = vcombine.high %v2308_v30, %v2299_v24  ;;  %v2384_v30 = vrot.slane %v1113_v36, %v2159_v62  ;;  %v974_v60 = vrot.slane %v2310_v31, %v2130_v44 }
  0xc2   : > { %630 = vrot.lane.b32.xlu0 %v615_v45, %s1972_s29  ;;  %v621_v50 = vpack.i.b16 %v620_v26, %v619_v32  ;;  %v940_v11 = vrot.slane %v926_v41, %v2130_v44 }
  0xc3   : > { %v932_v51 = vpop.permute.xlu1 %931  ;;  %v930_v58 = vpop.permute.xlu0 %929 }
  0xc4   : > { %753 = vrot.lane.b32.xlu1 %v735_v52, %s1969_s13  ;;  %v982_v52 = vrot.slane %v932_v51, %v2130_v44  ;;  %v748_v51 = vshrl.u32 %v2337_v61, 16 }
  0xc6   : > { %759 = vrot.lane.b32.xlu0 %v744_v59, %s1972_s29  ;;  %v948_v59 = vrot.slane %v930_v58, %v2130_v44  ;;  %v749_v58 = vshrl.u32 %v2340_v3, 16 }
  0xc7   : > { %v1311_v48 = vpop.permute.xlu1 %1310  ;;  %v1309_v13 = vpop.permute.xlu0 %1308 }
  0xc8   : > { %632 = vrot.lane.b32.xlu1 %v618_v6, %s1973_s24  ;;  %v2349_v9 = vrot.slane %v1311_v48, %v2130_v44  ;;  %v2356_v34 = vrot.slane %v1309_v13, %v2130_v44  ;;  %v2391_v6 = vrot.slane %v1079_v40, %v2159_v62  ;;  %v949_v32 = vcombine.low %v940_v11, %v948_v59 }
  0xca   : > { %761 = vrot.lane.b32.xlu0 %v747_v46, %s1973_s24  ;;  %v984_v46 = vcombine.high %v974_v60, %v982_v52 }
  0xcb   : > { %v1315_v18 = vpop.permute.xlu1 %1314  ;;  %v1313_v28 = vpop.permute.xlu0 %1312 }
  0xcc   : > { %v2353_v20 = vrot.slane %v1315_v18, %v2130_v44  ;;  %v2361_v27 = vrot.slane %v1313_v28, %v2130_v44  ;;  %755 = vrot.lane.b32.xlu1 %v738_v23, %s1970_s14  ;;  %v950_v18 = vcombine.high %v940_v11, %v948_v59  ;;  %v983_v28 = vcombine.low %v974_v60, %v982_v52 }
  0xcd   : > { %v2435_v60 = vrot.slane %v949_v32, %v2159_v62 }
  0xce   : > { %v1366_v21 = vcombine.low %v2349_v9, %v2353_v20  ;;  %v1332_v49 = vcombine.low %v2356_v34, %v2361_v27  ;;  %626 = vrot.lane.b32.xlu0 %v609_v35, %s1970_s14  ;;  %v1144_v35 = vpack.i.b16 %v2384_v30, %v2391_v6 }
  0xcf   : > { %v1440_v39 = vpop.permute.xlu1 %1439  ;;  %v1438_v53 = vpop.permute.xlu0 %1437 }
  0xd0   : > { %v2369_v45 = vrot.slane %v1366_v21, %v2159_v62  ;;  %v2377_v22 = vrot.slane %v1332_v49, %v2159_v62  ;;  %634 = vrot.lane.b32.xlu1 %v621_v50, %s1974_s30  ;;  %v2398_v15 = vrot.slane %v1438_v53, %v2130_v44  ;;  %v2401_v61 = vrot.slane %v1440_v39, %v2130_v44 }
  0xd1   : > { %v750_v21 = vpack.i.b16 %v749_v58, %v748_v51  ;;  %v2424_v49 = vrot.slane %v984_v46, %v2159_v62  ;;  %v2427_v50 = vrot.slane %v950_v18, %v2159_v62  ;;  %v1128_v51 = vcombine.high %v2328_v54, %v1963_v8 }
  0xd2   : > { %v1382_v24 = vcombine.high %v2369_v45, %v1963_v8  ;;  %v1388_v29 = vshrl.u32 %v2369_v45, 16  ;;  %v1348_v12 = vcombine.high %v2377_v22, %v1963_v8  ;;  %v1387_v13 = vshrl.u32 %v2377_v22, 16 }
  0xd3   : > { %v1444_v48 = vpop.permute.xlu1 %1443  ;;  %v1442_v31 = vpop.permute.xlu0 %1441  ;;  %v1134_v58 = vshrl.u32 %v2328_v54, 16  ;;  %v1017_v16 = vshrl.u32 %v2424_v49, 16  ;;  %v1140_v57 = vshrl.u32 %v1128_v51, 16 }
  0xd4   : > { %v2404_v3 = vrot.slane %v1444_v48, %v2130_v44  ;;  %v1392_v19 = vpack.i.b16 %v1382_v24, %v1348_v12  ;;  %v1389_v23 = vpack.i.b16 %v1388_v29, %v1387_v13  ;;  %v2407_v41 = vrot.slane %v1442_v31, %v2130_v44 }
  0xd5   : > { %v1393_v52 = vshrl.u32 %v1348_v12, 16  ;;  %v1394_v53 = vshrl.u32 %v1382_v24, 16  ;;  %v2432_v29 = vrot.slane %v983_v28, %v2159_v62  ;;  %v1094_v24 = vcombine.high %v2331_v56, %v1963_v8 }
  0xd6   : > { %1410 = vrot.lane.b32.xlu0 %v1392_v19, %s1969_s13  ;;  %1408 = vrot.lane.b32.xlu1 %v1389_v23, %s1968_s9  ;;  %v1461_v36 = vcombine.low %v2398_v15, %v2407_v41  ;;  %v1495_v44 = vcombine.low %v2401_v61, %v2404_v3  ;;  %v1133_v48 = vshrl.u32 %v2331_v56, 16  ;;  %v1015_v31 = vpack.i.b16 %v2424_v49, %v2427_v50 }
  0xd7   : > { %v2409_v26 = vpop.permute.xlu1 %482  ;;  %v2417_v39 = vpop.permute.xlu0 %896  ;;  %v1395_v46 = vpack.i.b16 %v1394_v53, %v1393_v52  ;;  %v1138_v23 = vpack.i.b16 %v1128_v51, %v1094_v24  ;;  %v965_v52 = vcombine.high %v2435_v60, %v1963_v8  ;;  %v999_v53 = vcombine.high %v2432_v29, %v1963_v8 }
  0xd8   : > { %v2446_v11 = vrot.slane %v1461_v36, %v2159_v62  ;;  %v2449_v12 = vrot.slane %v1495_v44, %v2159_v62  ;;  %v1135_v28 = vpack.i.b16 %v1134_v58, %v1133_v48  ;;  %v1004_v36 = vshrl.u32 %v2435_v60, 16 }
  0xd9   : > { %v1005_v44 = vshrl.u32 %v2432_v29, 16  ;;  %v1145_v58 = vshrl.u32 %v2391_v6, 16  ;;  %v1146_v48 = vshrl.u32 %v2384_v30, 16  ;;  %v1009_v40 = vpack.i.b16 %v999_v53, %v965_v52 }
  0xda   : > { %1160 = vrot.lane.b32.xlu0 %v1144_v35, %s1971_s28  ;;  %763 = vrot.lane.b32.xlu1 %v750_v21, %s1974_s30  ;;  %v1975_v21 = vmov 0.0   ;;  %v1016_v19 = vshrl.u32 %v2427_v50, 16 }
  0xdb   : > { %v2429_v59 = vpop.permute.xlu1 %484  ;;  %v2451_v13 = vpop.permute.xlu0 %898  ;;  %1788 = vmatprep.subr.bf16.mxu0 %v1975_v21  ;;  %v1006_v35 = vpack.i.b16 %v1005_v44, %v1004_v36  ;;  %v1129_v36 = vcombine.high %v2384_v30, %v1963_v8  ;;  %v1139_v44 = vshrl.u32 %v1094_v24, 16  ;;  %v1147_v55 = vpack.i.b16 %v1146_v48, %v1145_v58  ;;  %1794 = vmatprep.mubr.msk.bf16.mxu0 %vm1976_vm6, %v1975_v21 }
  0xdc   : > { %v1018_v33 = vpack.i.b16 %v1017_v16, %v1016_v19  ;;  %v1011_v30 = vshrl.u32 %v999_v53, 16 }
  0xde   : > { %1412 = vrot.lane.b32.xlu0 %v1395_v46, %s1970_s14  ;;  %1031 = vrot.lane.b32.xlu1 %v1015_v31, %s1971_s28 }
  0xdf   : > { %v2455_v18 = vpop.permute.xlu1 %486  ;;  %v2461_v32 = vpop.permute.xlu0 %900 }
  0xe2   : > { %1156 = vrot.lane.b32.xlu0 %v1138_v23, %s1969_s13  ;;  %1154 = vrot.lane.b32.xlu1 %v1135_v28, %s1968_s9  ;;  %v1095_v28 = vcombine.high %v2391_v6, %v1963_v8 }
  0xe3   : > { %v2472_v46 = vpop.permute.xlu1 %902  ;;  %v2478_v31 = vpop.permute.xlu0 %488 }
  0xe6   : > { %1025 = vrot.lane.b32.xlu0 %v1006_v35, %s1968_s9  ;;  %1027 = vrot.lane.b32.xlu1 %v1009_v40, %s1969_s13  ;;  %v1367_v35 = vcombine.high %v2349_v9, %v2353_v20  ;;  %v1333_v40 = vcombine.high %v2356_v34, %v2361_v27  ;;  %v1010_v20 = vshrl.u32 %v965_v52, 16  ;;  %v1151_v27 = vshrl.u32 %v1095_v28, 16 }
  0xe7   : > { %v1280_v42 = vpop.permute.xlu1 %1279  ;;  %v2492_v38 = vpop.permute.xlu0 %490 }
  0xe8   : > { %v1295_v23 = vsel %vm496_vm1, %v1257_v25, %v1280_v42  ;;  %v1150_v25 = vpack.i.b16 %v1129_v36, %v1095_v28  ;;  %v1141_v42 = vpack.i.b16 %v1140_v57, %v1139_v44  ;;  %v1381_v51 = vrot.slane %v1367_v35, %v2159_v62 }
  0xe9   : > { %v1347_v9 = vrot.slane %v1333_v40, %v2159_v62  ;;  %v1152_v57 = vshrl.u32 %v1129_v36, 16  ;;  %v1012_v19 = vpack.i.b16 %v1011_v30, %v1010_v20  ;;  %v1000_v44 = vcombine.high %v2424_v49, %v1963_v8 }
  0xea   : > { %1162 = vrot.lane.b32.xlu0 %v1147_v55, %s1972_s29  ;;  %1033 = vrot.lane.b32.xlu1 %v1018_v33, %s1972_s29  ;;  %v1400_v48 = vshrl.u32 %v1381_v51, 16  ;;  %v1383_v40 = vcombine.high %v1381_v51, %v1963_v8 }
  0xeb   : > { %v2498_v37 = vpop.permute.xlu1 %904  ;;  %v1282_v6 = vpop.permute.xlu0 %1281  ;;  %v1398_v24 = vpack.i.b16 %v1381_v51, %v1347_v9  ;;  %v1153_v52 = vpack.i.b16 %v1152_v57, %v1151_v27  ;;  %v1399_v58 = vshrl.u32 %v1347_v9, 16  ;;  %v1349_v35 = vcombine.high %v1347_v9, %v1963_v8 }
  0xec   : > { %v1297_v34 = vsel %vm500_vm2, %v1295_v23, %v1282_v6  ;;  %v966_v23 = vcombine.high %v2427_v50, %v1963_v8  ;;  %v1023_v4 = vshrl.u32 %v1000_v44, 16  ;;  %v1462_v6 = vcombine.high %v2398_v15, %v2407_v41 }
  0xed   : > { %v1401_v33 = vpack.i.b16 %v1400_v48, %v1399_v58  ;;  %v1405_v5 = vshrl.u32 %v1349_v35, 16  ;;  %v1404_v30 = vpack.i.b16 %v1383_v40, %v1349_v35  ;;  %v1496_v51 = vcombine.high %v2401_v61, %v2404_v3  ;;  %v1595_v35 = vld [vmem:[%s2702_s3] sm:$0xff] }
  0xee   : > { %1164 = vrot.lane.b32.xlu0 %v1150_v25, %s1973_s24  ;;  %1158 = vrot.lane.b32.xlu1 %v1141_v42, %s1970_s14  ;;  %v1021_v50 = vpack.i.b16 %v1000_v44, %v966_v23  ;;  %v1022_v42 = vshrl.u32 %v966_v23, 16  ;;  %v1476_v15 = vrot.slane %v1462_v6, %v2159_v62  ;;  %v2706_v6 = vpack.i.b16 %v2166_v0, %v2163_v63 }
  0xef   : > { %v1284_v16 = vpop.permute.xlu1 %1283  ;;  %v1510_v61 = vrot.slane %v1496_v51, %v2159_v62 }
  0xf0   : > { %v1299_v55 = vsel %vm503_vm3, %v1297_v34, %v1284_v16  ;;  %v1024_v9 = vpack.i.b16 %v1023_v4, %v1022_v42  ;;  %v1516_v34 = vshrl.u32 %v2446_v11, 16  ;;  %v1517_v16 = vshrl.u32 %v2449_v12, 16 }
  0xf1   : > { %v1527_v58 = vpack.i.b16 %v1510_v61, %v1476_v15  ;;  %v1528_v48 = vshrl.u32 %v1476_v15, 16  ;;  %v1478_v23 = vcombine.high %v1476_v15, %v1963_v8  ;;  %v499_v51 = vsel %vm496_vm1, %v2706_v6, %v2409_v26 }
  0xf2   : > { %1414 = vrot.lane.b32.xlu0 %v1398_v24, %s1971_s28  ;;  %1029 = vrot.lane.b32.xlu1 %v1012_v19, %s1970_s14  ;;  %v1518_v3 = vpack.i.b16 %v1517_v16, %v1516_v34  ;;  %v1529_v24 = vshrl.u32 %v1510_v61, 16  ;;  %v1512_v19 = vcombine.high %v1510_v61, %v1963_v8  ;;  %v2707_v16 = vpack.i.b16 %v2173_v2, %v2170_v1 }
  0xf3   : > { %v2508_v53 = vpop.permute.xlu1 %494 }
  0xf4   : > { %v1530_v62 = vpack.i.b16 %v1529_v24, %v1528_v48  ;;  %v1533_v44 = vpack.i.b16 %v1512_v19, %v1478_v23 }
  0xf6   : > { %1166 = vrot.lane.b32.xlu0 %v1153_v52, %s1974_s30  ;;  %1289 = vrot.lane.b32.xlu1 %v1275_v10, %s1973_s24  ;;  %v1406_v10 = vshrl.u32 %v1383_v40, 16  ;;  %v493_v40 = vpop.permute.xlu0 %492 }
  0xf7   : > { %v1286_v28 = vpop.permute.xlu1 %1285 }
  0xf8   : > { %v1301_v36 = vsel %vm506_vm4, %v1299_v55, %v1286_v28  ;;  %v1407_v20 = vpack.i.b16 %v1406_v10, %v1405_v5  ;;  %v1477_v55 = vcombine.high %v2446_v11, %v1963_v8  ;;  %v1534_v28 = vshrl.u32 %v1478_v23, 16 }
  0xfa   : > { %1416 = vrot.lane.b32.xlu0 %v1401_v33, %s1972_s29  ;;  %1035 = vrot.lane.b32.xlu1 %v1021_v50, %s1973_s24  ;;  %v1522_v27 = vshrl.u32 %v1477_v55, 16  ;;  %v907_v33 = vpop.permute.xlu0 %906 }
  0xfb   : > { %v1288_v25 = vpop.permute.xlu1 %1287 }
  0xfc   : > { %v2527_v49 = vsel %vm509_vm5, %v1301_v36, %v1288_v25  ;;  %v1535_v36 = vshrl.u32 %v1512_v19, 16 }
  0xfe   : > { %1291 = vrot.lane.b32.xlu0 %v2248_v17, %s1974_s30  ;;  %1418 = vrot.lane.b32.xlu1 %v1404_v30, %s1973_s24  ;;  %v1511_v17 = vcombine.high %v2449_v12, %v1963_v8  ;;  %v1536_v8 = vpack.i.b16 %v1535_v36, %v1534_v28  ;;  %v909_v50 = vpop.permute.xlu0 %908 }
 0x100   : > { %v1521_v41 = vpack.i.b16 %v1511_v17, %v1477_v55  ;;  %v1523_v57 = vshrl.u32 %v1511_v17, 16  ;;  %v912_v55 = vsel %vm496_vm1, %v2707_v16, %v2417_v39  ;;  %v2710_v16 = vpack.i.b16 %v2328_v54, %v2331_v56 }
 0x101   : > { %v914_v63 = vsel %vm500_vm2, %v912_v55, %v2451_v13  ;;  %v2709_v13 = vpack.i.b16 %v2283_v7, %v2287_v14 }
 0x102   : > { %1037 = vrot.lane.b32.xlu0 %v1024_v9, %s1974_s30  ;;  %1420 = vrot.lane.b32.xlu1 %v1407_v20, %s1974_s30  ;;  %v1524_v52 = vpack.i.b16 %v1523_v57, %v1522_v27  ;;  %v502_v20 = vsel %vm500_vm2, %v499_v51, %v2429_v59  ;;  %v2708_v59 = vpack.i.b16 %v2269_v47, %v2263_v43 }
 0x103   : > { %v505_v15 = vsel %vm503_vm3, %v502_v20, %v2455_v18  ;;  %v916_v1 = vsel %vm503_vm3, %v914_v63, %v2461_v32 }
 0x104   : > { %v508_v0 = vsel %vm506_vm4, %v505_v15, %v2478_v31  ;;  %v918_v32 = vsel %vm506_vm4, %v916_v1, %v2472_v46 }
 0x105   : > { %v511_v18 = vsel %vm509_vm5, %v508_v0, %v2492_v38  ;;  %v920_v19 = vsel %vm509_vm5, %v918_v32, %v2498_v37 }
 0x106   : > { %1537 = vrot.lane.b32.xlu0 %v1518_v3, %s1968_s9  ;;  %1539 = vrot.lane.b32.xlu1 %v1521_v41, %s1969_s13  ;;  %v514_v38 = vsel %vm512_vm7, %v511_v18, %v493_v40  ;;  %s355_s13 = scalar_lea.vmem %s2703_s4, %s1776_s17 }
 0x10a   : > { %1541 = vrot.lane.b32.xlu0 %v1524_v52, %s1970_s14  ;;  %1543 = vrot.lane.b32.xlu1 %v1527_v58, %s1971_s28  ;;  %v517_v58 = vsel %vm515_vm8, %v514_v38, %v2508_v53 }
 0x10e   : > { %1545 = vrot.lane.b32.xlu0 %v1530_v62, %s1972_s29  ;;  %1547 = vrot.lane.b32.xlu1 %v1533_v44, %s1973_s24  ;;  %v922_v44 = vsel %vm512_vm7, %v920_v19, %v907_v33 }
 0x10f   : > { %v924_v36 = vsel %vm515_vm8, %v922_v44, %v909_v50 }
 0x112   : > { %1549 = vrot.lane.b32.xlu0 %v1536_v8, %s1974_s30  ;;  %1598 = vperm.xlu1 %1885, %v1595_v35  }
 0x126   : > { %v629_v25 = vpop.permute.xlu0 %628 }
 0x12a   : > { %v623_v42 = vpop.permute.xlu0 %622 }
 0x12b   : > { %v638_v3 = vsel %vm496_vm1, %v2708_v59, %v623_v42  ;;  %v1571_v42 = vrot.slane %v924_v36, 2  ;;  %v2711_v59 = vpack.i.b16 %v2432_v29, %v2435_v60 }
 0x12e   : > { %v758_v4 = vpop.permute.xlu1 %757 }
 0x130   : > { %v752_v5 = vpop.permute.xlu0 %751 }
 0x131   : > { %v767_v31 = vsel %vm496_vm1, %v2709_v13, %v752_v5 }
 0x132   : > { %v625_v10 = vpop.permute.xlu1 %624 }
 0x133   : > { %v640_v2 = vsel %vm500_vm2, %v638_v3, %v625_v10 }
 0x134   : > { %v631_v30 = vpop.permute.xlu0 %630 }
 0x136   : > { %v754_v9 = vpop.permute.xlu1 %753 }
 0x137   : > { %v769_v43 = vsel %vm500_vm2, %v767_v31, %v754_v9 }
 0x138   : > { %v760_v34 = vpop.permute.xlu0 %759 }
 0x13a   : > { %v633_v17 = vpop.permute.xlu1 %632 }
 0x13c   : > { %v762_v61 = vpop.permute.xlu0 %761 }
 0x13e   : > { %v756_v26 = vpop.permute.xlu1 %755 }
 0x13f   : > { %v771_v27 = vsel %vm503_vm3, %v769_v43, %v756_v26 }
 0x140   : > { %v627_v39 = vpop.permute.xlu0 %626  ;;  %v773_v52 = vsel %vm506_vm4, %v771_v27, %v758_v4 }
 0x141   : > { %v642_v41 = vsel %vm503_vm3, %v640_v2, %v627_v39  ;;  %v775_v28 = vsel %vm509_vm5, %v773_v52, %v760_v34  ;;  %v2712_v39 = vpack.i.b16 %v2369_v45, %v2377_v22 }
 0x142   : > { %v644_v47 = vsel %vm506_vm4, %v642_v41, %v629_v25  ;;  %v635_v14 = vpop.permute.xlu1 %634  ;;  %v777_v8 = vsel %vm512_vm7, %v775_v28, %v762_v61 }
 0x143   : > { %v646_v57 = vsel %vm509_vm5, %v644_v47, %v631_v30 }
 0x144   : > { %v648_v7 = vsel %vm512_vm7, %v646_v57, %v633_v17 }
 0x145   : > { %v650_v24 = vsel %vm515_vm8, %v648_v7, %v635_v14 }
 0x146   : > { %v1567_v46 = vrot.slane %v650_v24, 6 }
 0x148   : > { %v1411_v48 = vpop.permute.xlu0 %1410  ;;  %v1409_v23 = vpop.permute.xlu1 %1408  ;;  %v1580_v62 = vsel %vm1578_vm9, %v517_v58, %v1567_v46 }
 0x149   : > { %v1424_v18 = vsel %vm496_vm1, %v2712_v39, %v1409_v23 }
 0x14a   : > { %v1426_v41 = vsel %vm500_vm2, %v1424_v18, %v1411_v48 }
 0x14c   : > { %v1161_v35 = vpop.permute.xlu0 %1160  ;;  %v764_v37 = vpop.permute.xlu1 %763 }
 0x14d   : > { %v779_v40 = vsel %vm515_vm8, %v777_v8, %v764_v37  ;;  %v2713_v8 = vpack.i.b16 %v2449_v12, %v2446_v11 }
 0x14e   : > { %v1569_v25 = vrot.slane %v779_v40, 4 }
 0x150   : > { %v1413_v53 = vpop.permute.xlu0 %1412  ;;  %v1032_v4 = vpop.permute.xlu1 %1031  ;;  %v1582_v5 = vsel %vm377_vm0, %v1580_v62, %v1569_v25 }
 0x151   : > { %v1585_v10 = vsel %vm1583_vm10, %v1582_v5, %v1571_v42  ;;  %v1428_v32 = vsel %vm503_vm3, %v1426_v41, %v1413_v53 }
 0x152   : > { %1789 = vmatpush3.bf16.msra.mxu0 %v1585_v10 }
 0x153   : > { %1790 = vmatprep.subr.bf16.mxu0 %v1975_v21 }
 0x154   : > { %v1157_v33 = vpop.permute.xlu0 %1156  ;;  %v1155_v50 = vpop.permute.xlu1 %1154 }
 0x155   : > { %v1170_v55 = vsel %vm496_vm1, %v2710_v16, %v1155_v50 }
 0x156   : > { %v1172_v61 = vsel %vm500_vm2, %v1170_v55, %v1157_v33 }
 0x158   : > { %v1026_v30 = vpop.permute.xlu0 %1025  ;;  %v1028_v6 = vpop.permute.xlu1 %1027 }
 0x159   : > { %v1041_v3 = vsel %vm496_vm1, %v2711_v59, %v1026_v30  ;;  %v1594_v30 = vld [vmem:[%s2701_s2] sm:$0xf] }
 0x15a   : > { %v1043_v2 = vsel %vm500_vm2, %v1041_v3, %v1028_v6 }
 0x15c   : > { %v1163_v51 = vpop.permute.xlu0 %1162  ;;  %v1034_v9 = vpop.permute.xlu1 %1033 }
 0x160   : > { %v1165_v20 = vpop.permute.xlu0 %1164  ;;  %v1159_v34 = vpop.permute.xlu1 %1158 }
 0x161   : > { %v1174_v63 = vsel %vm503_vm3, %v1172_v61, %v1159_v34 }
 0x162   : > { %v1176_v1 = vsel %vm506_vm4, %v1174_v63, %v1161_v35 }
 0x163   : > { %v1178_v31 = vsel %vm509_vm5, %v1176_v1, %v1163_v51 }
 0x164   : > { %v1415_v17 = vpop.permute.xlu0 %1414  ;;  %v1030_v15 = vpop.permute.xlu1 %1029  ;;  %v1180_v60 = vsel %vm512_vm7, %v1178_v31, %v1165_v20 }
 0x165   : > { %v1045_v13 = vsel %vm503_vm3, %v1043_v2, %v1030_v15  ;;  %v1430_v22 = vsel %vm506_vm4, %v1428_v32, %v1415_v17 }
 0x166   : > { %v1047_v29 = vsel %vm506_vm4, %v1045_v13, %v1032_v4 }
 0x167   : > { %v1049_v7 = vsel %vm509_vm5, %v1047_v29, %v1034_v9 }
 0x168   : > { %v1167_v0 = vpop.permute.xlu0 %1166  ;;  %v1290_v26 = vpop.permute.xlu1 %1289 }
 0x169   : > { %v1182_v27 = vsel %vm515_vm8, %v1180_v60, %v1167_v0  ;;  %v1305_v45 = vsel %vm512_vm7, %v2527_v49, %v1290_v26 }
 0x16a   : > { %v1573_v14 = vrot.slane %v1182_v27, 6 }
 0x16c   : > { %v1417_v54 = vpop.permute.xlu0 %1416  ;;  %v1036_v56 = vpop.permute.xlu1 %1035 }
 0x16d   : > { %v1432_v38 = vsel %vm509_vm5, %v1430_v22, %v1417_v54  ;;  %v1051_v24 = vsel %vm512_vm7, %v1049_v7, %v1036_v56 }
 0x170   : > { %v1292_v43 = vpop.permute.xlu0 %1291  ;;  %v1419_v47 = vpop.permute.xlu1 %1418 }
 0x171   : > { %v1307_v57 = vsel %vm515_vm8, %v1305_v45, %v1292_v43  ;;  %v1434_v19 = vsel %vm512_vm7, %v1432_v38, %v1419_v47 }
 0x172   : > { %v1575_v58 = vrot.slane %v1307_v57, 4 }
 0x174   : > { %v1038_v52 = vpop.permute.xlu0 %1037  ;;  %v1421_v46 = vpop.permute.xlu1 %1420 }
 0x175   : > { %v1053_v48 = vsel %vm515_vm8, %v1051_v24, %v1038_v52  ;;  %v1436_v49 = vsel %vm515_vm8, %v1434_v19, %v1421_v46 }
 0x176   : > { %v1588_v23 = vsel %vm1578_vm9, %v1053_v48, %v1573_v14  ;;  %v1577_v62 = vrot.slane %v1436_v49, 2 }
 0x177   : > { %v1590_v44 = vsel %vm377_vm0, %v1588_v23, %v1575_v58 }
 0x178   : > { %v1538_v28 = vpop.permute.xlu0 %1537  ;;  %v1540_v36 = vpop.permute.xlu1 %1539  ;;  %v1592_v35 = vsel %vm1583_vm10, %v1590_v44, %v1577_v62 }
 0x179   : > { %v1553_v37 = vsel %vm496_vm1, %v2713_v8, %v1538_v28  ;;  %1791 = vmatpush3.bf16.msra.mxu0 %v1592_v35 }
 0x17a   : > { %1792 = vmatprep.subr.bf16.mxu0 %v1975_v21  ;;  %v1555_v40 = vsel %vm500_vm2, %v1553_v37, %v1540_v36 }
 0x17c   : > { %v1542_v25 = vpop.permute.xlu0 %1541  ;;  %v1544_v42 = vpop.permute.xlu1 %1543 }
 0x17d   : > { %v1557_v53 = vsel %vm503_vm3, %v1555_v40, %v1542_v25 }
 0x17e   : > { %v1559_v4 = vsel %vm506_vm4, %v1557_v53, %v1544_v42 }
 0x180   : > { %v1546_v5 = vpop.permute.xlu0 %1545  ;;  %v1548_v12 = vpop.permute.xlu1 %1547 }
 0x181   : > { %v1561_v11 = vsel %vm509_vm5, %v1559_v4, %v1546_v5 }
 0x182   : > { %v1563_v10 = vsel %vm512_vm7, %v1561_v11, %v1548_v12 }
 0x184   : > { %v1550_v33 = vpop.permute.xlu0 %1549 }
 0x185   : > { %v1565_v21 = vsel %vm515_vm8, %v1563_v10, %v1550_v33 }
 0x186   : > { %v1605_v50 = vsel %vm1578_vm9, %v1565_v21, 0 }
 0x187   : > { %1793 = vmatpush3.bf16.msra.mxu0 %v1605_v50 }
 0x18a   : > { %1795 = vmatmul.mubr.msk.bf16.vlgmr.msra.gmra.mrb[0].mxu0 %vm1601_vm11, %v1594_v30 }
 0x191   : > { %v1599_v6 = vpop.permute.xlu1 %1598 }
 0x25d   : > { %v1641_v51 = vpop.f32.mrb[0].mxu0 }
 0x25e   : > { %v1642_v9 = vadd.f32 %v1641_v51, %v1599_v6  ;;  %v1796_v20 = vpop.f32.mrb[1].mxu0 }
 0x25f   : > { %v1644_v34 = vpop.f32.mrb[2].mxu0 }
 0x260   : > { %vm1647_vm12 = vcmp.gt.f32.partialorder %v1642_v9, 0.0  ;;  %v1648_v16 = vmul.f32 0.01, %v1642_v9  ;;  %v1797_v55 = vpop.f32.mrb[3].mxu0 }
 0x262   : > { %v1649_v17 = vsel %vm1647_vm12, %v1642_v9, %v1648_v16 }
 0x263   : > { %1650 = vst [vmem:[%s355_s13] sm:$0xff] %v1649_v17 }
 0x264 PF: > { %s14_s23 = sadd.s32 1, %s1961_s23   ;;  %s2714_s15 = smov %s1933_s16 }
 0x265   : > { %p11_p1 = scmp.ge.s32.totalorder %s14_s23, 6   ;;  %s2715_s16 = smov %s2082_s12 }
 0x266   : > { %s2716_s17 = smov %s1941_s18  ;;  %s2717_s18 = smov %s2079_s11 }
 0x267   : > { %s2718_s19 = smov %s1953_s21  ;;  %s2719_s20 = smov %s1957_s22 }
 0x268   : > { %s2720_s21 = smov %s2052_s26  ;;  %s2721_s22 = smov %s2725_s25 }
 0x269   :  { %13 = sbr.rel (!%p11_p1) target bundleno = 5 (0x5), region = 161 }

</bundles_post_ra>
